<compile_context>
chip_gen: v6e
topology: v6e:2x2x1
jax: 0.10.0
libtpu: 0.0.40
codegen_flags: <defaults>
</compile_context>

<pallas_src>
import functools

import jax
import jax.numpy as jnp
from jax.experimental import pallas as pl
from jax.experimental.pallas import tpu as pltpu  # noqa: F401  (kept for TPU-specific tuning hooks)


# ---------------------------------------------------------------------------
# Pallas kernel
# ---------------------------------------------------------------------------
def _mean_pool_kernel(x_ref, o_ref):
    # x_ref: (B, N, F) resident in VMEM; o_ref: (B, F)
    inv_n = 1.0 / x_ref.shape[1]                       # folded at trace time
    pooled = jnp.sum(x_ref[...], axis=1) * inv_n       # cross-sublane reduce on XLU
    o_ref[...] = pooled.astype(o_ref.dtype)            # single lane-dense store


def _mean_pool_3d(x):
    """x: (B, N, F) -> (B, F) mean over axis 1, single fused pallas_call."""
    B, N, F = x.shape
    return pl.pallas_call(
        _mean_pool_kernel,
        out_shape=jax.ShapeDtypeStruct((B, F), x.dtype),
        # No grid: whole-array blocks, one invocation, activation stays in VMEM.
        in_specs=[pl.BlockSpec((B, N, F), lambda: (0, 0, 0))],
        out_specs=pl.BlockSpec((B, F), lambda: (0, 0)),
    )(x)


@functools.partial(jax.jit, static_argnames=())
def global_mean_pooling(x):
    """Pallas equivalent of the PyTorch module: input.sum(dim=1) / input.shape[1].

    Works for any rank >= 2 input; trailing feature dims are flattened for the
    kernel and restored on the way out (pure reshape glue, no data movement
    beyond the kernel's single HBM->VMEM->HBM pass).
    """
    if x.ndim < 2:
        raise ValueError("global_mean_pooling expects rank >= 2 input")
    B, N = x.shape[0], x.shape[1]
    trailing = x.shape[2:]
    F = 1
    for d in trailing:
        F *= d
    x3 = x.reshape(B, N, F)
    out = _mean_pool_3d(x3)                            # (B, F)
    return out.reshape((B,) + trailing)


def global_mean_pooling_reference(x):
    """Pure-jnp reference mirroring the PyTorch forward exactly."""
    return x.sum(axis=1) / x.shape[1]


# ---------------------------------------------------------------------------
if __name__ == "__main__":
    key = jax.random.PRNGKey(0)

    # Small shapes consistent with the GCN context: (batch, num_nodes, hidden).
    B, N, H = 2, 8, 32
    x = jax.random.normal(key, (B, N, H), jnp.float32)

    y = jax.block_until_ready(global_mean_pooling(x))
    y_ref = global_mean_pooling_reference(x)

    assert y.shape == y_ref.shape == (B, H), (y.shape, y_ref.shape)
    assert jnp.allclose(y, y_ref, rtol=1e-6, atol=1e-6), (y, y_ref)

    # Also exercise a rank-4 input (module is rank-agnostic: sum over dim=1).
    x4 = jax.random.normal(jax.random.PRNGKey(1), (2, 4, 16, 16), jnp.float32)
    y4 = jax.block_until_ready(global_mean_pooling(x4))
    y4_ref = global_mean_pooling_reference(x4)
    assert y4.shape == y4_ref.shape == (2, 16, 16)
    assert jnp.allclose(y4, y4_ref, rtol=1e-6, atol=1e-6)

    print("KERNEL_OK")
</pallas_src>

<mosaic_0001>
module attributes {stable_mosaic.version = 11 : i64} {
  func.func @_mean_pool_kernel(%arg0: memref<2x8x32xf32, #tpu.memory_space<vmem>>, %arg1: memref<2x32xf32, #tpu.memory_space<vmem>>) attributes {dimension_semantics = [], scalar_prefetch = 0 : i64, scratch_operands = 0 : i64, tpu.core_type = #tpu.core_type<tc>} {
    %c0 = arith.constant 0 : index
    %c0_0 = arith.constant 0 : index
    %c0_1 = arith.constant 0 : index
    %0 = vector.load %arg0[%c0, %c0_0, %c0_1] : memref<2x8x32xf32, #tpu.memory_space<vmem>>, vector<2x8x32xf32>
    %cst = arith.constant dense<0.000000e+00> : vector<2x32xf32>
    %1 = vector.multi_reduction <add>, %0, %cst [1] : vector<2x8x32xf32> to vector<2x32xf32>
    %cst_2 = arith.constant 1.250000e-01 : f32
    %2 = vector.broadcast %cst_2 : f32 to vector<2x32xf32>
    %3 = arith.mulf %1, %2 : vector<2x32xf32>
    %c0_3 = arith.constant 0 : index
    %c0_4 = arith.constant 0 : index
    %4 = vector.load %arg1[%c0_3, %c0_4] : memref<2x32xf32, #tpu.memory_space<vmem>>, vector<2x32xf32>
    tpu.vector_store %arg1[%c0_3, %c0_4], %3 {strides = array<i32>} : memref<2x32xf32, #tpu.memory_space<vmem>>, vector<2x32xf32>,
    return
  }
}

</mosaic_0001>

<bundles_post_ra>
// kernel: global_mean_pooling.1
= control target key start
LH: loop header
LB: loop body
LE: loop exit
PB: predicated region body
PF: predicated region fallthrough
CT: control target
= control target key end

     0   :  { %6 = vsyncpa [#allocation3], 0  ;;  %s132_s0 = inlined_call_operand.hbm [shape: f32[2,8,32], index: 0, kind: input, shape index: {}]   ;;  %s133_s1 = inlined_call_operand.hbm [shape: f32[2,32], index: 1, kind: output, shape index: {}]  }
   0x1   :  { %7 = vsyncpa [#allocation4], 0  ;;  %s112_s6 = smov [#allocation2]  }
   0x2   :  { %s13_s7 = sshll.u32 %s112_s6, 4  ;;  %s14_s7 = int_to_ptr.vmem [resolvable:$true] %s13_s7 }
   0x3   :  { %s76_s8 = scalar_lea.vmem %s14_s7, 256  ;;  %p81_p1 = scmp.lt.s32.totalorder %s14_s7, %s14_s7 }
   0x4   :  { %p77_p0 = scmp.ne.s32.totalorder %s14_s7, %s76_s8  ;;  %p82_p2 = scmp.lt.s32.totalorder %s76_s8, %s76_s8 }
   0x6   :  { %p83_p3 = por %p82_p2, %p81_p1 }
   0x8   :  { %p84_p4 = pnand %p83_p3, %p77_p0 }
   0xa   :  { %87 = shalt.err (!%p84_p4)
}
   0xb   :  { %s113_s9 = smov 128   ;;  %s114_s10 = smov 8  }
   0xc   :  { %19 = dma.hbm_to_vmem [thread:$0]  %s132_s0, 256, %s14_s7, [#allocation3], %s113_s9, %s113_s9, %s114_s10  }
   0xd   :  { %108 = dma.done.wait [#allocation3], 256  }
   0xe   :  { %109 = vsyncadd [#allocation3], 4294967040  ;;  %vm25_vm0 = vcmask 261120   ;;  %v23_v0 = vld [vmem:[#allocation2] sm:$0xff]  ;;  %v24_v1 = vld [vmem:[#allocation2 + $0x8] sm:$0xff]  ;;  %s115_s0 = smov [#allocation5]  }
   0xf   :  { %v26_v2 = vsel %vm25_vm0, %v23_v0, 0.0  ;;  %v33_v3 = vsel %vm25_vm0, %v24_v1, 0.0  ;;  %s55_s13 = sshll.u32 %s115_s0, 4  ;;  %vm44_vm1 = vcmask 1041409   ;;  %vm47_vm2 = vcmask 254976   ;;  %s56_s13 = int_to_ptr.vmem [resolvable:$true] %s55_s13 }
  0x10   :  { %v27_v4 = vrot.slane %v26_v2, 4  ;;  %v34_v5 = vrot.slane %v33_v3, 4  ;;  %s88_s14 = scalar_lea.vmem %s56_s13, 32  ;;  %p93_p6 = scmp.lt.s32.totalorder %s56_s13, %s56_s13 }
  0x11   :  { %p89_p5 = scmp.ne.s32.totalorder %s56_s13, %s88_s14  ;;  %p94_p7 = scmp.lt.s32.totalorder %s88_s14, %s88_s14 }
  0x12   :  { %v28_v6 = vadd.f32 %v27_v4, %v26_v2  ;;  %v35_v7 = vadd.f32 %v34_v5, %v33_v3 }
  0x13   :  { %p95_p8 = por %p94_p7, %p93_p6 }
  0x14   :  { %v29_v8 = vrot.slane %v28_v6, 2  ;;  %v36_v9 = vrot.slane %v35_v7, 2 }
  0x15   :  { %p96_p9 = pnand %p95_p8, %p89_p5 }
  0x16   :  { %v30_v10 = vadd.f32 %v29_v8, %v28_v6  ;;  %v37_v11 = vadd.f32 %v36_v9, %v35_v7 }
  0x18   :  { %v31_v12 = vrot.slane %v30_v10, 1  ;;  %v38_v13 = vrot.slane %v37_v11, 1 }
  0x1a   :  { %v32_v14 = vadd.f32 %v31_v12, %v30_v10  ;;  %v39_v15 = vadd.f32 %v38_v13, %v37_v11 }
  0x1c   :  { %v40_v16 = vmul.f32 0.125, %v32_v14  ;;  %v41_v17 = vmul.f32 0.125, %v39_v15 }
  0x1e   :  { %v45_v18 = vsel %vm44_vm1, %v41_v17, %v40_v16 }
  0x1f   :  { %48 = vst.msk [vmem:[#allocation5] sm:$0x3] %vm47_vm2, %v45_v18 }
  0x20   :  { %99 = shalt.err (!%p96_p9)
}
  0x21   :  { %58 = dma.vmem_to_hbm [thread:$0]  %s56_s13, 32, %s133_s1, [#allocation4]  }
  0x22   :  { %110 = dma.done.wait [#allocation4], 32  }
  0x23   :  { %111 = vsyncadd [#allocation4], 4294967264 }
  0x24   :  { %62 = vsyncpa [#allocation3], 1 }
  0x25   :  { %63 = vsyncpa [#allocation4], 1 }

</bundles_post_ra>
